<compile_context>
chip_gen: v6e
topology: v6e:2x2x1
jax: 0.10.0
libtpu: 0.0.40
codegen_flags: <defaults>
</compile_context>

<pallas_src>
import functools

import jax
import jax.numpy as jnp
import numpy as np
from jax.experimental import pallas as pl
from jax.experimental.pallas import tpu as pltpu

_LANE = 128


def _round_up(n, m):
    return (n + m - 1) // m * m


def _mlp_kernel(x_ref, w1_ref, b1_ref, w2_ref, b2_ref, w3_ref, b3_ref, o_ref):
    # One batch tile per grid step; full (padded) weights resident in VMEM.
    x = x_ref[...]

    h1 = jnp.dot(x, w1_ref[...], preferred_element_type=jnp.float32) + b1_ref[...]
    h1 = jnp.maximum(h1, 0.0)                                   # ReLU (f32)

    h2 = (jnp.dot(h1.astype(w2_ref.dtype), w2_ref[...],
                  preferred_element_type=jnp.float32) + b2_ref[...])
    h2 = jnp.maximum(h2, 0.0)                                   # ReLU (f32)

    out = (jnp.dot(h2.astype(w3_ref.dtype), w3_ref[...],
                   preferred_element_type=jnp.float32) + b3_ref[...])
    o_ref[...] = out.astype(o_ref.dtype)


def init_params(key, input_size, output_size, hidden=256, dtype=jnp.float32):
    """torch.nn.Linear-style init (uniform +-1/sqrt(fan_in)).
    Weights stored as (in, out) = transpose of PyTorch's (out, in)."""
    ks = jax.random.split(key, 6)

    def linear(kw, kb, fan_in, fan_out):
        bound = 1.0 / np.sqrt(fan_in)
        w = jax.random.uniform(kw, (fan_in, fan_out), dtype, -bound, bound)
        b = jax.random.uniform(kb, (1, fan_out), dtype, -bound, bound)
        return w, b

    w1, b1 = linear(ks[0], ks[1], input_size, hidden)
    w2, b2 = linear(ks[2], ks[3], hidden, hidden)
    w3, b3 = linear(ks[4], ks[5], hidden, output_size)
    return {"w1": w1, "b1": b1, "w2": w2, "b2": b2, "w3": w3, "b3": b3}


def prepare_params(params, *, compute_dtype=jnp.float32):
    """One-time: lane-pad w1 rows / w3+b3 cols to multiples of 128 and cast
    weights to the compute dtype (biases stay f32: they add onto f32 accums).
    Zero padding preserves the math (zero x columns hit zero w1 rows; padded
    output columns are zero and sliced off)."""
    w1, b1 = params["w1"], params["b1"]
    w2, b2 = params["w2"], params["b2"]
    w3, b3 = params["w3"], params["b3"]

    in_dim, hidden = w1.shape
    out_dim = w3.shape[1]
    assert hidden % _LANE == 0, "hidden size must be a multiple of 128"

    in_pad = _round_up(in_dim, _LANE)
    out_pad = _round_up(out_dim, _LANE)

    if in_pad != in_dim:
        w1 = jnp.pad(w1, ((0, in_pad - in_dim), (0, 0)))
    if out_pad != out_dim:
        w3 = jnp.pad(w3, ((0, 0), (0, out_pad - out_dim)))
        b3 = jnp.pad(b3, ((0, 0), (0, out_pad - out_dim)))

    return {
        "w1": w1.astype(compute_dtype),
        "b1": b1.astype(jnp.float32).reshape(1, hidden),
        "w2": w2.astype(compute_dtype),
        "b2": b2.astype(jnp.float32).reshape(1, hidden),
        "w3": w3.astype(compute_dtype),
        "b3": b3.astype(jnp.float32).reshape(1, out_pad),
    }


def mlp_forward(x, prepared, *, out_dim, batch_tile=512, out_dtype=jnp.float32):
    """x: (B, input_size). prepared: output of prepare_params().

    batch_tile: rows per grid step (512-1024 recommended; the kernel is
    grid-overhead / HBM bound, so bigger tiles are better until VMEM limits).
    Compute dtype is taken from the prepared weights (f32 or bf16); MXU
    accumulation is always f32.
    """
    w1, b1 = prepared["w1"], prepared["b1"]
    w2, b2 = prepared["w2"], prepared["b2"]
    w3, b3 = prepared["w3"], prepared["b3"]

    B, in_dim = x.shape
    in_pad, hidden = w1.shape
    out_pad = w3.shape[1]
    compute_dtype = w1.dtype

    x = x.astype(compute_dtype)
    if in_pad != in_dim:
        # Lane-align the (tiny) feature dim only; no batch-axis pad.
        x = jnp.pad(x, ((0, 0), (0, in_pad - in_dim)))

    # bf16 packs 16 rows per sublane group; f32 packs 8.
    row_align = 16 if compute_dtype == jnp.bfloat16 else 8

    if B >= 2 * batch_tile:
        tile = batch_tile
    else:
        # Few enough rows that one full tile would leave a single grid step:
        # split into ~2 equal steps so both v7x TensorCores get work.
        tile = min(batch_tile, max(row_align, _round_up(pl.cdiv(B, 2), row_align)))
    grid = (pl.cdiv(B, tile),)

    # VMEM footprint estimate (double-buffered x/out tiles + weights + h1/h2).
    cbytes = jnp.dtype(compute_dtype).itemsize
    obytes = jnp.dtype(out_dtype).itemsize
    est = (2 * tile * in_pad * cbytes
           + 2 * tile * out_pad * obytes
           + 2 * tile * hidden * 4
           + 2 * (in_pad * hidden + hidden * hidden + hidden * out_pad) * cbytes
           + 2 * (2 * hidden + out_pad) * 4)
    cp_kwargs = dict(dimension_semantics=("parallel",))
    if est > 16 * 1024 * 1024:  # beyond v5e's default scoped VMEM
        cp_kwargs["vmem_limit_bytes"] = min(int(est * 3 // 2), 64 * 1024 * 1024)

    def batch_map(i):
        return (i, 0)

    def full_map(i):
        return (0, 0)

    out = pl.pallas_call(
        _mlp_kernel,
        out_shape=jax.ShapeDtypeStruct((B, out_pad), out_dtype),
        grid_spec=pl.GridSpec(
            grid=grid,
            in_specs=[
                pl.BlockSpec((tile, in_pad), batch_map),    # x tile (ragged last block OK)
                pl.BlockSpec((in_pad, hidden), full_map),   # w1 (grid-invariant)
                pl.BlockSpec((1, hidden), full_map),        # b1
                pl.BlockSpec((hidden, hidden), full_map),   # w2
                pl.BlockSpec((1, hidden), full_map),        # b2
                pl.BlockSpec((hidden, out_pad), full_map),  # w3 (lane-padded)
                pl.BlockSpec((1, out_pad), full_map),       # b3
            ],
            out_specs=pl.BlockSpec((tile, out_pad), batch_map),
        ),
        compiler_params=pltpu.CompilerParams(**cp_kwargs),
    )(x, w1, b1, w2, b2, w3, b3)

    if out_pad != out_dim:
        out = out[:, :out_dim]
    return out


def mlp_reference(x, p):
    h1 = jnp.maximum(x @ p["w1"] + p["b1"], 0.0)
    h2 = jnp.maximum(h1 @ p["w2"] + p["b2"], 0.0)
    return h2 @ p["w3"] + p["b3"]


if __name__ == "__main__":
    key = jax.random.PRNGKey(0)
    k_x1, k_x2, k_p = jax.random.split(key, 3)

    # MuJoCo-like sizes: ragged obs dim 17, action dim 6.
    input_size, output_size = 17, 6
    params = init_params(k_p, input_size, output_size)

    fwd = jax.jit(functools.partial(mlp_forward, out_dim=output_size, batch_tile=512))

    # --- f32 operand path (tight tolerance) ---
    prepared_f32 = prepare_params(params, compute_dtype=jnp.float32)

    # Case 1: tiny batch -> two small grid steps (keeps both v7x cores busy).
    x_small = jax.random.normal(k_x1, (32, input_size), dtype=jnp.float32)
    out_small = jax.block_until_ready(fwd(x_small, prepared_f32))
    ref_small = mlp_reference(x_small, params)
    assert out_small.shape == (32, output_size)
    np.testing.assert_allclose(np.asarray(out_small), np.asarray(ref_small),
                               rtol=2e-5, atol=2e-5)

    # Case 2: ragged larger batch -> ragged final block handled by Pallas
    # (no wrapper-side batch pad).
    x_big = jax.random.normal(k_x2, (260, input_size), dtype=jnp.float32)
    out_big = jax.block_until_ready(fwd(x_big, prepared_f32))
    ref_big = mlp_reference(x_big, params)
    assert out_big.shape == (260, output_size)
    np.testing.assert_allclose(np.asarray(out_big), np.asarray(ref_big),
                               rtol=2e-5, atol=2e-5)

    # --- bf16 operand path (recommended default on v6e/v7x; f32 accumulation,
    #     looser tolerance because operands are rounded to bf16) ---
    prepared_bf16 = prepare_params(params, compute_dtype=jnp.bfloat16)
    out_bf16 = jax.block_until_ready(fwd(x_big, prepared_bf16))
    assert out_bf16.shape == (260, output_size)
    np.testing.assert_allclose(np.asarray(out_bf16), np.asarray(ref_big),
                               rtol=5e-2, atol=5e-2)

    print("KERNEL_OK")
</pallas_src>

<mosaic_0001>
module attributes {stable_mosaic.version = 11 : i64} {
  func.func @_mlp_kernel(%arg0: i32, %arg1: memref<16x128xf32, #tpu.memory_space<vmem>>, %arg2: memref<128x256xf32, #tpu.memory_space<vmem>>, %arg3: memref<1x256xf32, #tpu.memory_space<vmem>>, %arg4: memref<256x256xf32, #tpu.memory_space<vmem>>, %arg5: memref<1x256xf32, #tpu.memory_space<vmem>>, %arg6: memref<256x128xf32, #tpu.memory_space<vmem>>, %arg7: memref<1x128xf32, #tpu.memory_space<vmem>>, %arg8: memref<16x128xf32, #tpu.memory_space<vmem>>) attributes {dimension_semantics = [#tpu.dimension_semantics<parallel>], iteration_bounds = array<i64: 2>, scalar_prefetch = 0 : i64, scratch_operands = 0 : i64, tpu.core_type = #tpu.core_type<tc>, window_params = [{transform_indices = @transform_0, window_bounds = array<i64: 16, 128>}, {pipeline_mode = #tpu.pipeline_mode<synchronous>, transform_indices = @transform_1, window_bounds = array<i64: 128, 256>}, {pipeline_mode = #tpu.pipeline_mode<synchronous>, transform_indices = @transform_2, window_bounds = array<i64: 1, 256>}, {pipeline_mode = #tpu.pipeline_mode<synchronous>, transform_indices = @transform_3, window_bounds = array<i64: 256, 256>}, {pipeline_mode = #tpu.pipeline_mode<synchronous>, transform_indices = @transform_4, window_bounds = array<i64: 1, 256>}, {pipeline_mode = #tpu.pipeline_mode<synchronous>, transform_indices = @transform_5, window_bounds = array<i64: 256, 128>}, {pipeline_mode = #tpu.pipeline_mode<synchronous>, transform_indices = @transform_6, window_bounds = array<i64: 1, 128>}, {transform_indices = @transform_7, window_bounds = array<i64: 16, 128>}]} {
    %c0 = arith.constant 0 : index
    %c0_0 = arith.constant 0 : index
    %0 = vector.load %arg1[%c0, %c0_0] : memref<16x128xf32, #tpu.memory_space<vmem>>, vector<16x128xf32>
    %c0_1 = arith.constant 0 : index
    %c0_2 = arith.constant 0 : index
    %1 = vector.load %arg2[%c0_1, %c0_2] : memref<128x256xf32, #tpu.memory_space<vmem>>, vector<128x256xf32>
    %cst = arith.constant dense<0.000000e+00> : vector<16x256xf32>
    %2 = tpu.matmul %0, %1, %cst {dimension_numbers = #tpu.dot_dimension_numbers<[1], [0], [0], [1], [0, 0, 1, 1], [], []>} : vector<16x128xf32>, vector<128x256xf32>, vector<16x256xf32> -> vector<16x256xf32>
    %c0_3 = arith.constant 0 : index
    %c0_4 = arith.constant 0 : index
    %3 = vector.load %arg3[%c0_3, %c0_4] : memref<1x256xf32, #tpu.memory_space<vmem>>, vector<1x256xf32>
    %4 = vector.broadcast %3 : vector<1x256xf32> to vector<16x256xf32>
    %5 = arith.addf %2, %4 : vector<16x256xf32>
    %cst_5 = arith.constant 0.000000e+00 : f32
    %6 = vector.broadcast %cst_5 : f32 to vector<16x256xf32>
    %7 = arith.maximumf %5, %6 : vector<16x256xf32>
    %c0_6 = arith.constant 0 : index
    %c0_7 = arith.constant 0 : index
    %8 = vector.load %arg4[%c0_6, %c0_7] : memref<256x256xf32, #tpu.memory_space<vmem>>, vector<256x256xf32>
    %cst_8 = arith.constant dense<0.000000e+00> : vector<16x256xf32>
    %9 = tpu.matmul %7, %8, %cst_8 {dimension_numbers = #tpu.dot_dimension_numbers<[1], [0], [0], [1], [0, 0, 1, 1], [], []>} : vector<16x256xf32>, vector<256x256xf32>, vector<16x256xf32> -> vector<16x256xf32>
    %c0_9 = arith.constant 0 : index
    %c0_10 = arith.constant 0 : index
    %10 = vector.load %arg5[%c0_9, %c0_10] : memref<1x256xf32, #tpu.memory_space<vmem>>, vector<1x256xf32>
    %11 = vector.broadcast %10 : vector<1x256xf32> to vector<16x256xf32>
    %12 = arith.addf %9, %11 : vector<16x256xf32>
    %cst_11 = arith.constant 0.000000e+00 : f32
    %13 = vector.broadcast %cst_11 : f32 to vector<16x256xf32>
    %14 = arith.maximumf %12, %13 : vector<16x256xf32>
    %c0_12 = arith.constant 0 : index
    %c0_13 = arith.constant 0 : index
    %15 = vector.load %arg6[%c0_12, %c0_13] : memref<256x128xf32, #tpu.memory_space<vmem>>, vector<256x128xf32>
    %cst_14 = arith.constant dense<0.000000e+00> : vector<16x128xf32>
    %16 = tpu.matmul %14, %15, %cst_14 {dimension_numbers = #tpu.dot_dimension_numbers<[1], [0], [0], [1], [0, 0, 1, 1], [], []>} : vector<16x256xf32>, vector<256x128xf32>, vector<16x128xf32> -> vector<16x128xf32>
    %c0_15 = arith.constant 0 : index
    %c0_16 = arith.constant 0 : index
    %17 = vector.load %arg7[%c0_15, %c0_16] : memref<1x128xf32, #tpu.memory_space<vmem>>, vector<1x128xf32>
    %18 = vector.broadcast %17 : vector<1x128xf32> to vector<16x128xf32>
    %19 = arith.addf %16, %18 : vector<16x128xf32>
    %c0_17 = arith.constant 0 : index
    %c0_18 = arith.constant 0 : index
    %20 = vector.load %arg8[%c0_17, %c0_18] : memref<16x128xf32, #tpu.memory_space<vmem>>, vector<16x128xf32>
    tpu.vector_store %arg8[%c0_17, %c0_18], %19 {strides = array<i32>} : memref<16x128xf32, #tpu.memory_space<vmem>>, vector<16x128xf32>,
    return
  }
  func.func @transform_0(%arg0: i32) -> (i32, i32) {
    %c0_i32 = arith.constant 0 : i32
    %c0_i32_0 = arith.constant 0 : i32
    return %arg0, %c0_i32 : i32, i32
  }
  func.func @transform_1(%arg0: i32) -> (i32, i32) {
    %c0_i32 = arith.constant 0 : i32
    %c0_i32_0 = arith.constant 0 : i32
    %c0_i32_1 = arith.constant 0 : i32
    return %c0_i32, %c0_i32_0 : i32, i32
  }
  func.func @transform_2(%arg0: i32) -> (i32, i32) {
    %c0_i32 = arith.constant 0 : i32
    %c0_i32_0 = arith.constant 0 : i32
    %c0_i32_1 = arith.constant 0 : i32
    return %c0_i32, %c0_i32_0 : i32, i32
  }
  func.func @transform_3(%arg0: i32) -> (i32, i32) {
    %c0_i32 = arith.constant 0 : i32
    %c0_i32_0 = arith.constant 0 : i32
    %c0_i32_1 = arith.constant 0 : i32
    return %c0_i32, %c0_i32_0 : i32, i32
  }
  func.func @transform_4(%arg0: i32) -> (i32, i32) {
    %c0_i32 = arith.constant 0 : i32
    %c0_i32_0 = arith.constant 0 : i32
    %c0_i32_1 = arith.constant 0 : i32
    return %c0_i32, %c0_i32_0 : i32, i32
  }
  func.func @transform_5(%arg0: i32) -> (i32, i32) {
    %c0_i32 = arith.constant 0 : i32
    %c0_i32_0 = arith.constant 0 : i32
    %c0_i32_1 = arith.constant 0 : i32
    return %c0_i32, %c0_i32_0 : i32, i32
  }
  func.func @transform_6(%arg0: i32) -> (i32, i32) {
    %c0_i32 = arith.constant 0 : i32
    %c0_i32_0 = arith.constant 0 : i32
    %c0_i32_1 = arith.constant 0 : i32
    return %c0_i32, %c0_i32_0 : i32, i32
  }
  func.func @transform_7(%arg0: i32) -> (i32, i32) {
    %c0_i32 = arith.constant 0 : i32
    %c0_i32_0 = arith.constant 0 : i32
    return %arg0, %c0_i32 : i32, i32
  }
}

</mosaic_0001>

<bundles_post_ra>
// kernel: mlp_forward.1
= control target key start
LH: loop header
LB: loop body
LE: loop exit
PB: predicated region body
PF: predicated region fallthrough
CT: control target
= control target key end

     0   :  { %12 = vsyncpa [#allocation3], 0  ;;  %s1166_s0 = inlined_call_operand.vmem [shape: f32[32,128], index: 0, kind: input, shape index: {}]   ;;  %s1167_s1 = inlined_call_operand.hbm [shape: f32[128,256], index: 1, kind: input, shape index: {}]   ;;  %s1168_s2 = inlined_call_operand.vmem [shape: f32[1,256], index: 2, kind: input, shape index: {}]   ;;  %s1169_s3 = inlined_call_operand.hbm [shape: f32[256,256], index: 3, kind: input, shape index: {}]   ;;  %s1170_s4 = inlined_call_operand.vmem [shape: f32[1,256], index: 4, kind: input, shape index: {}]   ;;  %s1171_s5 = inlined_call_operand.hbm [shape: f32[256,128], index: 5, kind: input, shape index: {}]   ;;  %s1172_s6 = inlined_call_operand.vmem [shape: f32[1,128], index: 6, kind: input, shape index: {}]   ;;  %s1173_s7 = inlined_call_operand.vmem [shape: f32[32,128], index: 7, kind: output, shape index: {}]  }
   0x1   :  { %13 = vsyncpa [#allocation5], 0  ;;  %s1055_s24 = smov 0  }
   0x2 LB: > { %s813_s25 = sadd.s32 4294967295, %s1005_s24   ;;  %p815_p0 = scmp.ge.s32.totalorder %s1005_s24, 1  ;;  %s1005_s24 = sphi %s1055_s24, %s19_s24  }
   0x3   : > { %p202_p1 = scmp.lt.s32.totalorder %s1005_s24, 3  ;;  %p1065_p2 = scmp.eq.s32.totalorder %s813_s25, 0 }
   0x4   : > { %s1007_s28 = smov [#allocation4]   ;;  %s1008_s30 = smov [#allocation2]  }
   0x5   : > { %p1069_p3 = pnand %p815_p0, %p202_p1  ;;  %s230_s29 = sshll.u32 %s1007_s28, 4  ;;  %s231_s29 = int_to_ptr.vmem [resolvable:$true] %s230_s29 }
   0x6   : > { %s214_s8 = sshll.u32 %s1008_s30, 4  ;;  %s1009_s10 = smov [#allocation6]   ;;  %s1075_s8 = int_to_ptr.vmem [resolvable:$true] %s214_s8 }
   0x7   : > { %p881_p4 = pneg %p1069_p3  ;;  %s246_s11 = sshll.u32 %s1009_s10, 4  ;;  %s1083_s11 = int_to_ptr.vmem [resolvable:$true] %s246_s11 }
   0x8   : > { %s924_s12 = scalar_lea.vmem %s231_s29, 8192  ;;  %p932_p10 = scmp.lt.s32.totalorder %s231_s29, %s231_s29 }
   0x9   : > { %p1079_p5 = pnand %p1065_p2, %p881_p4  ;;  %p925_p7 = scmp.ne.s32.totalorder %s231_s29, %s924_s12 }
   0xa   : > { %p933_p11 = scmp.lt.s32.totalorder %s924_s12, %s924_s12 }
   0xb   : > { %p915_p6 = pneg %p1079_p5 }
   0xc   : > { %p934_p12 = por %p933_p11, %p932_p10 }
   0xd   : > { %p927_p8 = pnand %p925_p7, %p915_p6 }
   0xf   : > { %p928_p9 = pneg %p927_p8 }
  0x11   : > { %p935_p13 = pnand %p934_p12, %p928_p9 }
  0x13   : > { %938 = shalt.err (!%p935_p13)
}
  0x14   : > { %s1010_s13 = smov 256   ;;  %s1011_s14 = smov 16  }
  0x15   : > { %887 = dma.hbm_to_vmem [thread:$0]  (!%p1079_p5), %s1169_s3, 8192, %s231_s29, [#allocation5], %s1010_s13, %s1010_s13, %s1011_s14  }
  0x16   : > { %s950_s17 = scalar_lea.vmem %s1075_s8, 4096  ;;  %p958_p7 = scmp.lt.s32.totalorder %s1075_s8, %s1075_s8 }
  0x17   : > { %p951_p0 = scmp.ne.s32.totalorder %s1075_s8, %s950_s17  ;;  %p959_p8 = scmp.lt.s32.totalorder %s950_s17, %s950_s17 }
  0x19   : > { %p953_p1 = pnand %p951_p0, %p915_p6  ;;  %p960_p9 = por %p959_p8, %p958_p7 }
  0x1b   : > { %p954_p4 = pneg %p953_p1 }
  0x1d   : > { %p961_p10 = pnand %p960_p9, %p954_p4 }
  0x1f   : > { %964 = shalt.err (!%p961_p10)
}
  0x20   : > { %884 = dma.hbm_to_vmem [thread:$0]  (!%p1079_p5), %s1167_s1, 4096, %s1075_s8, [#allocation3], %s1010_s13, %s1010_s13, %s1011_s14  }
  0x21   : > { %s976_s20 = scalar_lea.vmem %s1083_s11, 4096  ;;  %p984_p0 = scmp.lt.s32.totalorder %s1083_s11, %s1083_s11 }
  0x22   : > { %p977_p11 = scmp.ne.s32.totalorder %s1083_s11, %s976_s20  ;;  %p985_p1 = scmp.lt.s32.totalorder %s976_s20, %s976_s20 }
  0x24   : > { %p979_p12 = pnand %p977_p11, %p915_p6  ;;  %p986_p4 = por %p985_p1, %p984_p0 }
  0x26   : > { %p980_p13 = pneg %p979_p12 }
  0x28   : > { %p987_p7 = pnand %p986_p4, %p980_p13 }
  0x2a   : > { %990 = shalt.err (!%p987_p7)
}
  0x2b   : > { %s1012_s21 = smov 128   ;;  %s1013_s22 = smov 8  }
  0x2c   : > { %890 = dma.hbm_to_vmem [thread:$0]  (!%p1079_p5), %s1171_s5, 4096, %s1083_s11, [#allocation5], %s1012_s21, %s1012_s21, %s1013_s22  }
  0x2d   : > { %274 = sbr.rel (%p1069_p3) target bundleno = 690 (0x2b2), region = 48 }
  0x32   : > { %996 = dma.done.wait (%p1065_p2), [#allocation3], 4096  }
  0x33   : > { %998 = vsyncadd (%p1065_p2), [#allocation3], 4294963200 }
  0x34   : > { %1000 = dma.done.wait (%p1065_p2), [#allocation5], 12288  }
  0x35   : > { %1002 = vsyncadd (%p1065_p2), [#allocation5], 4294955008  ;;  %v1014_v0 = vmov 0.0   ;;  %v359_v1 = vld [vmem:[#allocation2 + $0xf8] sm:$0xff]  ;;  %v358_v2 = vld [vmem:[#allocation2 + $0xf0] sm:$0xff]  ;;  %s1134_s26 = sshll.u32 %s813_s25, 1 }
  0x36   : > { %436 = vmatprep.mubr.f32.mxu0 %v1014_v0  ;;  %v357_v3 = vld [vmem:[#allocation2 + $0xe8] sm:$0xff]  ;;  %372 = vmatprep.subr.mxu0 %v359_v1  ;;  %v356_v4 = vld [vmem:[#allocation2 + $0xe0] sm:$0xff]  ;;  %v355_v5 = vld [vmem:[#allocation2 + $0xd8] sm:$0xff]  ;;  %p315_p2 = scmp.lt.s32.totalorder %s1134_s26, 3 }
  0x37   : > { %373 = vmatpush1.msra.mxu0 %v358_v2  ;;  %v354_v6 = vld [vmem:[#allocation2 + $0xd0] sm:$0xff]  ;;  %v353_v7 = vld [vmem:[#allocation2 + $0xc8] sm:$0xff]  ;;  %v352_v8 = vld [vmem:[#allocation2 + $0xc0] sm:$0xff] }
  0x38   : > { %374 = vmatprep.subr.mxu0 %v357_v3  ;;  %v351_v9 = vld [vmem:[#allocation2 + $0xb8] sm:$0xff]  ;;  %v350_v10 = vld [vmem:[#allocation2 + $0xb0] sm:$0xff]  ;;  %v349_v11 = vld [vmem:[#allocation2 + $0xa8] sm:$0xff]  ;;  %s1178_s26 = smov (!%p315_p2, %s1134_s26), 3 }
  0x39   : > { %375 = vmatpush1.msra.mxu0 %v356_v4  ;;  %v348_v12 = vld [vmem:[#allocation2 + $0xa0] sm:$0xff]  ;;  %v347_v13 = vld [vmem:[#allocation2 + $0x98] sm:$0xff]  ;;  %v346_v14 = vld [vmem:[#allocation2 + $0x90] sm:$0xff]  ;;  %s825_s25 = sshll.u32 %s1178_s26, 3 }
  0x3a   : > { %376 = vmatprep.subr.mxu0 %v355_v5  ;;  %v484_v15 = vld [vmem:[#allocation4 + $0xf8] sm:$0xff]  ;;  %v483_v16 = vld [vmem:[#allocation4 + $0xf0] sm:$0xff]  ;;  %v345_v17 = vld [vmem:[#allocation2 + $0x88] sm:$0xff]  ;;  %s318_s30 = scalar_lea.vmem %s1166_s0, %s825_s25  ;;  %s324_s16 = scalar_lea.vmem %s1173_s7, %s825_s25 }
  0x3b   : > { %377 = vmatpush1.msra.mxu0 %v354_v6  ;;  %529 = vmatprep.subr.mxu1 %v484_v15  ;;  %v482_v18 = vld [vmem:[#allocation4 + $0xe8] sm:$0xff]  ;;  %v481_v19 = vld [vmem:[#allocation4 + $0xe0] sm:$0xff]  ;;  %v480_v21 = vld [vmem:[#allocation4 + $0xd8] sm:$0xff] }
  0x3c   : > { %378 = vmatprep.subr.mxu0 %v353_v7  ;;  %v344_v20 = vld [vmem:[#allocation2 + $0x80] sm:$0xff]  ;;  %530 = vmatpush1.msra.mxu1 %v483_v16  ;;  %v343_v22 = vld [vmem:[#allocation2 + $0x78] sm:$0xff]  ;;  %v479_v23 = vld [vmem:[#allocation4 + $0xd0] sm:$0xff] }
  0x3d   : > { %379 = vmatpush1.msra.mxu0 %v352_v8  ;;  %531 = vmatprep.subr.mxu1 %v482_v18  ;;  %v342_v24 = vld [vmem:[#allocation2 + $0x70] sm:$0xff]  ;;  %v478_v25 = vld [vmem:[#allocation4 + $0xc8] sm:$0xff]  ;;  %v477_v27 = vld [vmem:[#allocation4 + $0xc0] sm:$0xff] }
  0x3e   : > { %380 = vmatprep.subr.mxu0 %v351_v9  ;;  %532 = vmatpush1.msra.mxu1 %v481_v19  ;;  %v341_v26 = vld [vmem:[#allocation2 + $0x68] sm:$0xff]  ;;  %v340_v28 = vld [vmem:[#allocation2 + $0x60] sm:$0xff]  ;;  %v476_v29 = vld [vmem:[#allocation4 + $0xb8] sm:$0xff] }
  0x3f   : > { %381 = vmatpush1.msra.mxu0 %v350_v10  ;;  %533 = vmatprep.subr.mxu1 %v480_v21  ;;  %v339_v30 = vld [vmem:[#allocation2 + $0x58] sm:$0xff]  ;;  %v475_v31 = vld [vmem:[#allocation4 + $0xb0] sm:$0xff]  ;;  %v474_v33 = vld [vmem:[#allocation4 + $0xa8] sm:$0xff] }
  0x40   : > { %382 = vmatprep.subr.mxu0 %v349_v11  ;;  %534 = vmatpush1.msra.mxu1 %v479_v23  ;;  %v338_v32 = vld [vmem:[#allocation2 + $0x50] sm:$0xff]  ;;  %v337_v34 = vld [vmem:[#allocation2 + $0x48] sm:$0xff]  ;;  %v473_v35 = vld [vmem:[#allocation4 + $0xa0] sm:$0xff] }
  0x41   : > { %383 = vmatpush1.msra.mxu0 %v348_v12  ;;  %535 = vmatprep.subr.mxu1 %v478_v25  ;;  %v336_v36 = vld [vmem:[#allocation2 + $0x40] sm:$0xff]  ;;  %v472_v37 = vld [vmem:[#allocation4 + $0x98] sm:$0xff]  ;;  %v471_v39 = vld [vmem:[#allocation4 + $0x90] sm:$0xff] }
  0x42   : > { %384 = vmatprep.subr.mxu0 %v347_v13  ;;  %536 = vmatpush1.msra.mxu1 %v477_v27  ;;  %v335_v38 = vld [vmem:[#allocation2 + $0x38] sm:$0xff]  ;;  %v334_v40 = vld [vmem:[#allocation2 + $0x30] sm:$0xff]  ;;  %v470_v41 = vld [vmem:[#allocation4 + $0x88] sm:$0xff] }
  0x43   : > { %385 = vmatpush1.msra.mxu0 %v346_v14  ;;  %537 = vmatprep.subr.mxu1 %v476_v29  ;;  %v333_v42 = vld [vmem:[#allocation2 + $0x28] sm:$0xff]  ;;  %v469_v43 = vld [vmem:[#allocation4 + $0x80] sm:$0xff]  ;;  %v468_v45 = vld [vmem:[#allocation4 + $0x78] sm:$0xff] }
  0x44   : > { %386 = vmatprep.subr.mxu0 %v345_v17  ;;  %538 = vmatpush1.msra.mxu1 %v475_v31  ;;  %v332_v44 = vld [vmem:[#allocation2 + $0x20] sm:$0xff]  ;;  %v331_v46 = vld [vmem:[#allocation2 + $0x18] sm:$0xff]  ;;  %v467_v47 = vld [vmem:[#allocation4 + $0x70] sm:$0xff] }
  0x45   : > { %387 = vmatpush1.msra.mxu0 %v344_v20  ;;  %539 = vmatprep.subr.mxu1 %v474_v33  ;;  %v330_v48 = vld [vmem:[#allocation2 + $0x10] sm:$0xff]  ;;  %v466_v49 = vld [vmem:[#allocation4 + $0x68] sm:$0xff]  ;;  %v465_v51 = vld [vmem:[#allocation4 + $0x60] sm:$0xff] }
  0x46   : > { %388 = vmatprep.subr.mxu0 %v343_v22  ;;  %540 = vmatpush1.msra.mxu1 %v473_v35  ;;  %v329_v50 = vld [vmem:[#allocation2 + $0x8] sm:$0xff]  ;;  %v328_v52 = vld [vmem:[#allocation2] sm:$0xff]  ;;  %v464_v53 = vld [vmem:[#allocation4 + $0x58] sm:$0xff] }
  0x47   : > { %389 = vmatpush1.msra.mxu0 %v342_v24  ;;  %541 = vmatprep.subr.mxu1 %v472_v37  ;;  %v326_v54 = vld [vmem:[%s318_s30] sm:$0xff]  ;;  %v463_v55 = vld [vmem:[#allocation4 + $0x50] sm:$0xff]  ;;  %v462_v56 = vld [vmem:[#allocation4 + $0x48] sm:$0xff] }
  0x48   : > { %390 = vmatprep.subr.mxu0 %v341_v26  ;;  %542 = vmatpush1.msra.mxu1 %v471_v39  ;;  %v461_v57 = vld [vmem:[#allocation4 + $0x40] sm:$0xff]  ;;  %v460_v58 = vld [vmem:[#allocation4 + $0x38] sm:$0xff]  ;;  %v327_v59 = vld [vmem:[%s318_s30 + $0x8] sm:$0xff] }
  0x49   : > { %391 = vmatpush1.msra.mxu0 %v340_v28  ;;  %543 = vmatprep.subr.mxu1 %v470_v41  ;;  %v459_v60 = vld [vmem:[#allocation4 + $0x30] sm:$0xff]  ;;  %v458_v61 = vld [vmem:[#allocation4 + $0x28] sm:$0xff]  ;;  %v457_v62 = vld [vmem:[#allocation4 + $0x20] sm:$0xff] }
  0x4a   : > { %392 = vmatprep.subr.mxu0 %v339_v30  ;;  %544 = vmatpush1.msra.mxu1 %v469_v43  ;;  %v456_v63 = vld [vmem:[#allocation4 + $0x18] sm:$0xff]  ;;  %v455_v1 = vld [vmem:[#allocation4 + $0x10] sm:$0xff]  ;;  %v454_v2 = vld [vmem:[#allocation4 + $0x8] sm:$0xff] }
  0x4b   : > { %393 = vmatpush1.msra.mxu0 %v338_v32  ;;  %545 = vmatprep.subr.mxu1 %v468_v45  ;;  %v453_v3 = vld [vmem:[#allocation4] sm:$0xff]  ;;  %v516_v4 = vld [vmem:[#allocation4 + $0x1f8] sm:$0xff]  ;;  %v514_v5 = vld [vmem:[#allocation4 + $0x1e8] sm:$0xff] }
  0x4c   : > { %394 = vmatprep.subr.mxu0 %v337_v34  ;;  %546 = vmatpush1.msra.mxu1 %v467_v47  ;;  %v513_v6 = vld [vmem:[#allocation4 + $0x1e0] sm:$0xff]  ;;  %v512_v7 = vld [vmem:[#allocation4 + $0x1d8] sm:$0xff]  ;;  %v511_v8 = vld [vmem:[#allocation4 + $0x1d0] sm:$0xff] }
  0x4d   : > { %395 = vmatpush1.msra.mxu0 %v336_v36  ;;  %547 = vmatprep.subr.mxu1 %v466_v49  ;;  %v510_v9 = vld [vmem:[#allocation4 + $0x1c8] sm:$0xff]  ;;  %v509_v10 = vld [vmem:[#allocation4 + $0x1c0] sm:$0xff]  ;;  %v508_v11 = vld [vmem:[#allocation4 + $0x1b8] sm:$0xff] }
  0x4e   : > { %396 = vmatprep.subr.mxu0 %v335_v38  ;;  %548 = vmatpush1.msra.mxu1 %v465_v51  ;;  %v507_v12 = vld [vmem:[#allocation4 + $0x1b0] sm:$0xff]  ;;  %v506_v13 = vld [vmem:[#allocation4 + $0x1a8] sm:$0xff]  ;;  %v505_v14 = vld [vmem:[#allocation4 + $0x1a0] sm:$0xff] }
  0x4f   : > { %397 = vmatpush1.msra.mxu0 %v334_v40  ;;  %549 = vmatprep.subr.mxu1 %v464_v53  ;;  %v504_v15 = vld [vmem:[#allocation4 + $0x198] sm:$0xff]  ;;  %v503_v16 = vld [vmem:[#allocation4 + $0x190] sm:$0xff]  ;;  %v502_v17 = vld [vmem:[#allocation4 + $0x188] sm:$0xff] }
  0x50   : > { %398 = vmatprep.subr.mxu0 %v333_v42  ;;  %550 = vmatpush1.msra.mxu1 %v463_v55  ;;  %v501_v18 = vld [vmem:[#allocation4 + $0x180] sm:$0xff]  ;;  %v500_v19 = vld [vmem:[#allocation4 + $0x178] sm:$0xff]  ;;  %v499_v20 = vld [vmem:[#allocation4 + $0x170] sm:$0xff] }
  0x51   : > { %399 = vmatpush1.msra.mxu0 %v332_v44  ;;  %551 = vmatprep.subr.mxu1 %v462_v56  ;;  %v498_v21 = vld [vmem:[#allocation4 + $0x168] sm:$0xff]  ;;  %v497_v22 = vld [vmem:[#allocation4 + $0x160] sm:$0xff]  ;;  %v496_v23 = vld [vmem:[#allocation4 + $0x158] sm:$0xff] }
  0x52   : > { %400 = vmatprep.subr.mxu0 %v331_v46  ;;  %552 = vmatpush1.msra.mxu1 %v461_v57  ;;  %v495_v24 = vld [vmem:[#allocation4 + $0x150] sm:$0xff]  ;;  %v494_v25 = vld [vmem:[#allocation4 + $0x148] sm:$0xff]  ;;  %v493_v26 = vld [vmem:[#allocation4 + $0x140] sm:$0xff] }
  0x53   : > { %401 = vmatpush1.msra.mxu0 %v330_v48  ;;  %553 = vmatprep.subr.mxu1 %v460_v58  ;;  %v492_v27 = vld [vmem:[#allocation4 + $0x138] sm:$0xff]  ;;  %v491_v28 = vld [vmem:[#allocation4 + $0x130] sm:$0xff]  ;;  %v490_v29 = vld [vmem:[#allocation4 + $0x128] sm:$0xff] }
  0x54   : > { %402 = vmatprep.subr.mxu0 %v329_v50  ;;  %554 = vmatpush1.msra.mxu1 %v459_v60  ;;  %v489_v30 = vld [vmem:[#allocation4 + $0x120] sm:$0xff]  ;;  %v488_v31 = vld [vmem:[#allocation4 + $0x118] sm:$0xff]  ;;  %v487_v32 = vld [vmem:[#allocation4 + $0x110] sm:$0xff] }
  0x55   : > { %403 = vmatpush1.msra.mxu0 %v328_v52  ;;  %555 = vmatprep.subr.mxu1 %v458_v61  ;;  %v486_v33 = vld [vmem:[#allocation4 + $0x108] sm:$0xff]  ;;  %v485_v34 = vld [vmem:[#allocation4 + $0x100] sm:$0xff]  ;;  %v641_v35 = vld [vmem:[#allocation6 + $0xf8] sm:$0xff] }
  0x56   : > { %437 = vmatmul.mubr.f32.vlgmr.msra.gmra.mxu0 %v326_v54  ;;  %556 = vmatpush1.msra.mxu1 %v457_v62  ;;  %v625_v36 = vld [vmem:[#allocation6 + $0x78] sm:$0xff]  ;;  %v640_v37 = vld [vmem:[#allocation6 + $0xf0] sm:$0xff]  ;;  %v639_v39 = vld [vmem:[#allocation6 + $0xe8] sm:$0xff] }
  0x57   : > { %442 = vmatprep.mubr.f32.mxu0 %v1014_v0  ;;  %557 = vmatprep.subr.mxu1 %v456_v63  ;;  %v515_v0 = vld [vmem:[#allocation4 + $0x1f0] sm:$0xff]  ;;  %v623_v40 = vld [vmem:[#allocation6 + $0x68] sm:$0xff]  ;;  %v638_v41 = vld [vmem:[#allocation6 + $0xe0] sm:$0xff] }
  0x58   : > { %558 = vmatpush1.msra.mxu1 %v455_v1  ;;  %831 = vmatprep.subr.mxu0 %v641_v35  ;;  %v624_v38 = vld [vmem:[#allocation6 + $0x70] sm:$0xff]  ;;  %v622_v42 = vld [vmem:[#allocation6 + $0x60] sm:$0xff]  ;;  %v637_v43 = vld [vmem:[#allocation6 + $0xd8] sm:$0xff] }
  0x59   : > { %559 = vmatprep.subr.mxu1 %v454_v2  ;;  %832 = vmatpush3.msra.mxu0 %v625_v36  ;;  %v621_v44 = vld [vmem:[#allocation6 + $0x58] sm:$0xff]  ;;  %v636_v45 = vld [vmem:[#allocation6 + $0xd0] sm:$0xff]  ;;  %v635_v47 = vld [vmem:[#allocation6 + $0xc8] sm:$0xff] }
  0x5a   : > { %443 = vmatmul.mubr.f32.gmra.mxu0 %v327_v59  ;;  %560 = vmatpush1.msra.mxu1 %v453_v3  ;;  %v620_v46 = vld [vmem:[#allocation6 + $0x50] sm:$0xff]  ;;  %v619_v48 = vld [vmem:[#allocation6 + $0x48] sm:$0xff]  ;;  %v634_v49 = vld [vmem:[#allocation6 + $0xc0] sm:$0xff]  ;;  %v362_v59 = vlaneseq }
  0x5b   : > { %561 = vmatprep.subr.mxu1 %v516_v4  ;;  %833 = vmatprep.subr.mxu0 %v640_v37  ;;  %v618_v50 = vld [vmem:[#allocation6 + $0x40] sm:$0xff]  ;;  %v633_v51 = vld [vmem:[#allocation6 + $0xb8] sm:$0xff]  ;;  %v632_v53 = vld [vmem:[#allocation6 + $0xb0] sm:$0xff] }
  0x5c   : > { %562 = vmatpush2.msra.mxu1 %v515_v0  ;;  %834 = vmatpush3.msra.mxu0 %v624_v38  ;;  %v617_v52 = vld [vmem:[#allocation6 + $0x38] sm:$0xff]  ;;  %v616_v54 = vld [vmem:[#allocation6 + $0x30] sm:$0xff]  ;;  %v631_v55 = vld [vmem:[#allocation6 + $0xa8] sm:$0xff]  ;;  %v363_v60 = vshrl.u32 %v362_v59, 7 }
  0x5d   : > { %563 = vmatprep.subr.mxu1 %v514_v5  ;;  %835 = vmatprep.subr.mxu0 %v639_v39  ;;  %v615_v56 = vld [vmem:[#allocation6 + $0x28] sm:$0xff]  ;;  %v630_v57 = vld [vmem:[#allocation6 + $0xa0] sm:$0xff] }
  0x5e   : > { %564 = vmatpush2.msra.mxu1 %v513_v6  ;;  %836 = vmatpush3.msra.mxu0 %v623_v40  ;;  %v614_v58 = vld [vmem:[#allocation6 + $0x20] sm:$0xff]  ;;  %v364_v61 = vsub.s32 0, %v363_v60  ;;  %v368_v63 = vsub.s32 1, %v363_v60 }
  0x5f   : > { %565 = vmatprep.subr.mxu1 %v512_v7  ;;  %837 = vmatprep.subr.mxu0 %v638_v41  ;;  %v360_v62 = vld [vmem:[%s1168_s2] sm:$0x3] }
  0x60   : > { %566 = vmatpush2.msra.mxu1 %v511_v8  ;;  %838 = vmatpush3.msra.mxu0 %v622_v42  ;;  %v365_v1 = vrot.slane %v360_v62, %v364_v61  ;;  %v369_v2 = vrot.slane %v360_v62, %v368_v63  ;;  %v828_v38 = vld [vmem:[%s1172_s6] ss:$0 sm:$0xff] }
  0x61   : > { %567 = vmatprep.subr.mxu1 %v510_v9  ;;  %839 = vmatprep.subr.mxu0 %v637_v43 }
  0x62   : > { %568 = vmatpush2.msra.mxu1 %v509_v10  ;;  %840 = vmatpush3.msra.mxu0 %v621_v44 }
  0x63   : > { %569 = vmatprep.subr.mxu1 %v508_v11  ;;  %841 = vmatprep.subr.mxu0 %v636_v45 }
  0x64   : > { %570 = vmatpush2.msra.mxu1 %v507_v12  ;;  %842 = vmatpush3.msra.mxu0 %v620_v46 }
  0x65   : > { %571 = vmatprep.subr.mxu1 %v506_v13  ;;  %843 = vmatprep.subr.mxu0 %v635_v47 }
  0x66   : > { %572 = vmatpush2.msra.mxu1 %v505_v14  ;;  %844 = vmatpush3.msra.mxu0 %v619_v48  ;;  %v629_v14 = vld [vmem:[#allocation6 + $0x98] sm:$0xff] }
  0x67   : > { %573 = vmatprep.subr.mxu1 %v504_v15  ;;  %845 = vmatprep.subr.mxu0 %v634_v49  ;;  %v613_v15 = vld [vmem:[#allocation6 + $0x18] sm:$0xff] }
  0x68   : > { %574 = vmatpush2.msra.mxu1 %v503_v16  ;;  %846 = vmatpush3.msra.mxu0 %v618_v50  ;;  %v628_v16 = vld [vmem:[#allocation6 + $0x90] sm:$0xff] }
  0x69   : > { %575 = vmatprep.subr.mxu1 %v502_v17  ;;  %847 = vmatprep.subr.mxu0 %v633_v51  ;;  %v612_v17 = vld [vmem:[#allocation6 + $0x10] sm:$0xff] }
  0x6a   : > { %576 = vmatpush2.msra.mxu1 %v501_v18  ;;  %848 = vmatpush3.msra.mxu0 %v617_v52  ;;  %v627_v18 = vld [vmem:[#allocation6 + $0x88] sm:$0xff] }
  0x6b   : > { %577 = vmatprep.subr.mxu1 %v500_v19  ;;  %849 = vmatprep.subr.mxu0 %v632_v53  ;;  %v611_v19 = vld [vmem:[#allocation6 + $0x8] sm:$0xff] }
  0x6c   : > { %578 = vmatpush2.msra.mxu1 %v499_v20  ;;  %850 = vmatpush3.msra.mxu0 %v616_v54  ;;  %v626_v20 = vld [vmem:[#allocation6 + $0x80] sm:$0xff] }
  0x6d   : > { %579 = vmatprep.subr.mxu1 %v498_v21  ;;  %851 = vmatprep.subr.mxu0 %v631_v55  ;;  %v610_v21 = vld [vmem:[#allocation6] sm:$0xff] }
  0x6e   : > { %580 = vmatpush2.msra.mxu1 %v497_v22  ;;  %852 = vmatpush3.msra.mxu0 %v615_v56  ;;  %v517_v22 = vld [vmem:[%s1170_s4] sm:$0x3] }
  0x6f   : > { %581 = vmatprep.subr.mxu1 %v496_v23  ;;  %853 = vmatprep.subr.mxu0 %v630_v57  ;;  %v522_v23 = vrot.slane %v517_v22, %v364_v61 }
  0x70   : > { %582 = vmatpush2.msra.mxu1 %v495_v24  ;;  %854 = vmatpush3.msra.mxu0 %v614_v58  ;;  %v526_v24 = vrot.slane %v517_v22, %v368_v63 }
  0x71   : > { %583 = vmatprep.subr.mxu1 %v494_v25  ;;  %855 = vmatprep.subr.mxu0 %v629_v14 }
  0x72   : > { %584 = vmatpush2.msra.mxu1 %v493_v26  ;;  %856 = vmatpush3.msra.mxu0 %v613_v15 }
  0x73   : > { %585 = vmatprep.subr.mxu1 %v492_v27  ;;  %857 = vmatprep.subr.mxu0 %v628_v16 }
  0x74   : > { %586 = vmatpush2.msra.mxu1 %v491_v28  ;;  %858 = vmatpush3.msra.mxu0 %v612_v17 }
  0x75   : > { %587 = vmatprep.subr.mxu1 %v490_v29  ;;  %859 = vmatprep.subr.mxu0 %v627_v18 }
  0x76   : > { %588 = vmatpush2.msra.mxu1 %v489_v30  ;;  %860 = vmatpush3.msra.mxu0 %v611_v19 }
  0x77   : > { %589 = vmatprep.subr.mxu1 %v488_v31  ;;  %861 = vmatprep.subr.mxu0 %v626_v20 }
  0x78   : > { %590 = vmatpush2.msra.mxu1 %v487_v32  ;;  %862 = vmatpush3.msra.mxu0 %v610_v21 }
  0x79   : > { %591 = vmatprep.subr.mxu1 %v486_v33 }
  0x7a   : > { %592 = vmatpush2.msra.mxu1 %v485_v34 }
 0x116   : > { %v438_v3 = vpop.f32.mrf.mxu0 }
 0x117   : > { %v439_v4 = vadd.f32 %v438_v3, %v365_v1 }
 0x118   : > { %v440_v0 = vpop.f32.mrf.mxu0 }
 0x119   : > { %v441_v5 = vadd.f32 %v440_v0, %v369_v2  ;;  %v449_v8 = vmax.f32 %v439_v4, 0.0 }
 0x11a   : > { %v444_v6 = vpop.f32.mrf.mxu0 }
 0x11b   : > { %v450_v7 = vmax.f32 %v441_v5, 0.0  ;;  %v445_v9 = vadd.f32 %v444_v6, %v365_v1 }
 0x11c   : > { %v446_v10 = vpop.f32.mrf.mxu0 }
 0x11d   : > { %v447_v11 = vadd.f32 %v446_v10, %v369_v2  ;;  %593 = vmatprep.mubr.f32.mxu1 %v450_v7  ;;  %v451_v13 = vmax.f32 %v445_v9, 0.0 }
 0x11e   : > { %594 = vmatmul.mubr.f32.vlgmr.msra.gmra.mxu1 %v449_v8 }
 0x11f   : > { %v452_v12 = vmax.f32 %v447_v11, 0.0 }
 0x121   : > { %599 = vmatprep.mubr.f32.mxu1 %v452_v12 }
 0x122   : > { %600 = vmatmul.mubr.f32.gmra.mxu1 %v451_v13 }
 0x1de   : > { %v595_v25 = vpop.f32.mrf.mxu1 }
 0x1df   : > { %v596_v26 = vadd.f32 %v595_v25, %v522_v23 }
 0x1e0   : > { %v597_v27 = vpop.f32.mrf.mxu1 }
 0x1e1   : > { %v598_v28 = vadd.f32 %v597_v27, %v526_v24  ;;  %v606_v31 = vmax.f32 %v596_v26, 0.0 }
 0x1e2   : > { %v601_v29 = vpop.f32.mrf.mxu1 }
 0x1e3   : > { %v607_v30 = vmax.f32 %v598_v28, 0.0  ;;  %v602_v32 = vadd.f32 %v601_v29, %v522_v23 }
 0x1e4   : > { %v603_v33 = vpop.f32.mrf.mxu1 }
 0x1e5   : > { %v604_v34 = vadd.f32 %v603_v33, %v526_v24  ;;  %713 = vmatprep.mubr.f32.mxu0 %v607_v30  ;;  %v608_v36 = vmax.f32 %v602_v32, 0.0 }
 0x1e6   : > { %714 = vmatmul.mubr.f32.vlgmr.msra.gmra.mxu0 %v606_v31 }
 0x1e7   : > { %v609_v35 = vmax.f32 %v604_v34, 0.0 }
 0x1e9   : > { %718 = vmatprep.mubr.f32.mxu0 %v609_v35 }
 0x1ea   : > { %719 = vmatmul.mubr.f32.gmra.mxu0 %v608_v36 }
 0x2a6   : > { %v863_v37 = vpop.f32.mrf.mxu0 }
 0x2a8   : > { %v864_v39 = vpop.f32.mrf.mxu0 }
 0x2a9   : > { %v865_v40 = vadd.f32 %v864_v39, %v863_v37 }
 0x2aa   : > { %v866_v41 = vpop.f32.mrf.mxu0 }
 0x2ab   : > { %v716_v42 = vadd.f32 %v865_v40, %v828_v38 }
 0x2ac   : > { %v867_v43 = vpop.f32.mrf.mxu0 }
 0x2ad   : > { %724 = vst [vmem:[%s324_s16] sm:$0xff] %v716_v42  ;;  %v868_v44 = vadd.f32 %v867_v43, %v866_v41 }
 0x2af   : > { %v721_v45 = vadd.f32 %v868_v44, %v828_v38 }
 0x2b1   : > { %725 = vst [vmem:[%s324_s16 + $0x8] sm:$0xff] %v721_v45 }
 0x2b2 PF: > { %s19_s24 = sadd.s32 1, %s1005_s24  }
 0x2b3   : > { %p16_p3 = scmp.ge.s32.totalorder %s19_s24, 4  }
 0x2b5   :  { %18 = sbr.rel (!%p16_p3) target bundleno = 2 (0x2), region = 91 }
 0x2ba   :  { %748 = vsyncpa [#allocation3], 1 }
 0x2bb   :  { %750 = vsyncpa [#allocation3 + $0x1], 1 }
 0x2bc   :  { %751 = vsyncpa [#allocation5], 1 }

</bundles_post_ra>
